<compile_context>
chip_gen: v6e
topology: v6e:2x2x1
jax: 0.10.0
libtpu: 0.0.40
codegen_flags: <defaults>
</compile_context>

<pallas_src>
import jax
import jax.numpy as jnp
from jax.experimental import pallas as pl
from jax.experimental.pallas import tpu as pltpu

NEG_LARGE = -1e30  # fills padded class lanes so log_softmax ignores them


def _round_up(x: int, m: int) -> int:
    return ((x + m - 1) // m) * m


def mlp_kernel(x_ref, w1_ref, b1_ref, w2_ref, b2_ref, w3_ref, b3_ref, o_ref):
    # x: (TB, 784) f32 in VMEM; cast to bf16 in-kernel for the MXU (VPU filler).
    x = x_ref[...].astype(jnp.bfloat16)

    # Linear(784 -> 64) + ReLU   (bf16 MXU operands, f32 accumulation)
    h1 = jnp.dot(x, w1_ref[...], preferred_element_type=jnp.float32) + b1_ref[...]
    h1 = jnp.maximum(h1, 0.0)

    # Linear(64 -> 64) + ReLU
    h2 = jnp.dot(h1.astype(jnp.bfloat16), w2_ref[...],
                 preferred_element_type=jnp.float32) + b2_ref[...]
    h2 = jnp.maximum(h2, 0.0)

    # Linear(64 -> 128 padded). Padded class lanes carry bias = -1e30 so they
    # vanish in the max/exp/sum below (log_softmax over the real 10 classes).
    logits = jnp.dot(h2.astype(jnp.bfloat16), w3_ref[...],
                     preferred_element_type=jnp.float32) + b3_ref[...]

    # LogSoftmax(dim=1), numerically stable, lane-dense 128-wide store.
    m = jnp.max(logits, axis=1, keepdims=True)
    shifted = logits - m
    lse = jnp.log(jnp.sum(jnp.exp(shifted), axis=1, keepdims=True))
    o_ref[...] = shifted - lse


@jax.jit
def parameter_server_forward(x_nchw, params):
    w1, b1, w2, b2, w3, b3 = params
    B = x_nchw.shape[0]

    # nn.Flatten(): (B, C, H, W) -> (B, C*H*W), row-major — matches PyTorch.
    # Free layout-wise; x stays f32 (no HBM pad/cast pass for the input).
    x_flat = x_nchw.reshape(B, -1).astype(jnp.float32)
    in_features = x_flat.shape[1]            # 784 (kept at natural width)
    hidden = w1.shape[1]                     # 64
    num_classes = w3.shape[1]                # 10
    C_PAD = _round_up(num_classes, 128)      # 10 -> 128 (lane-dense output)

    # --- batch tiling: minimal sublane padding, ragged last tile via cdiv ---
    B_PAD = _round_up(B, 8)
    if B_PAD >= 1024:
        # >=2 grid steps so both TensorCores get work on 2-TC chips (v7x),
        # with tiles big enough (<=2048 rows) to amortize ~0.35us/step.
        TB = min(2048, _round_up(pl.cdiv(B_PAD, 2), 8))
    else:
        TB = B_PAD                           # small batch: single step
    grid = (pl.cdiv(B_PAD, TB),)

    # Only pad batch to the next multiple of 8 (typical batches: no copy at all).
    if B_PAD != B:
        x_in = jnp.zeros((B_PAD, in_features), jnp.float32).at[:B, :].set(x_flat)
    else:
        x_in = x_flat

    # Weights: bf16 MXU operands (tiny casts). w1 kept at (784, 64), no K-pad.
    w1_p = w1.astype(jnp.bfloat16)
    w2_p = w2.astype(jnp.bfloat16)
    w3_p = jnp.zeros((hidden, C_PAD), jnp.float32).at[:, :num_classes].set(w3)
    w3_p = w3_p.astype(jnp.bfloat16)

    # Biases stay f32; padded class lanes get a large negative bias.
    b1_p = b1.astype(jnp.float32)
    b2_p = b2.astype(jnp.float32)
    b3_p = jnp.full((1, C_PAD), NEG_LARGE, jnp.float32)
    b3_p = b3_p.at[:, :num_classes].set(b3.astype(jnp.float32))

    const = lambda i: (0, 0)   # weights/biases stay resident across grid steps

    cost = pl.CostEstimate(
        flops=2 * B_PAD * (in_features * hidden + hidden * hidden + hidden * C_PAD),
        transcendentals=B_PAD * (C_PAD + 1),
        bytes_accessed=(x_in.size * 4 + B_PAD * C_PAD * 4
                        + (w1_p.size + w2_p.size + w3_p.size) * 2
                        + (b1_p.size + b2_p.size + b3_p.size) * 4),
    )

    out = pl.pallas_call(
        mlp_kernel,
        out_shape=jax.ShapeDtypeStruct((B_PAD, C_PAD), jnp.float32),
        grid=grid,
        in_specs=[
            pl.BlockSpec((TB, in_features), lambda i: (i, 0)),   # x: full 784 lanes
            pl.BlockSpec((in_features, hidden), const),          # w1 full-extent
            pl.BlockSpec((1, hidden), const),
            pl.BlockSpec((hidden, hidden), const),
            pl.BlockSpec((1, hidden), const),
            pl.BlockSpec((hidden, C_PAD), const),
            pl.BlockSpec((1, C_PAD), const),
        ],
        out_specs=pl.BlockSpec((TB, C_PAD), lambda i: (i, 0)),
        compiler_params=pltpu.CompilerParams(
            dimension_semantics=("parallel",),
            vmem_limit_bytes=48 * 1024 * 1024,
        ),
        cost_estimate=cost,
    )(x_in, w1_p, b1_p, w2_p, b2_p, w3_p, b3_p)

    # Slice off batch / class padding (lane-dense store in kernel, slice here).
    return out[:B, :num_classes]


def init_params(key, in_features=784, hidden=64, num_classes=10):
    """Deterministic init mimicking PyTorch nn.Linear default U(-1/sqrt(fan_in), +)."""
    ks = jax.random.split(key, 6)

    def linear(kw, kb, fan_in, fan_out):
        bound = 1.0 / jnp.sqrt(fan_in)
        # Store weights as (fan_in, fan_out) so kernel does x @ W.
        w = jax.random.uniform(kw, (fan_in, fan_out), jnp.float32, -bound, bound)
        b = jax.random.uniform(kb, (1, fan_out), jnp.float32, -bound, bound)
        return w, b

    w1, b1 = linear(ks[0], ks[1], in_features, hidden)
    w2, b2 = linear(ks[2], ks[3], hidden, hidden)
    w3, b3 = linear(ks[4], ks[5], hidden, num_classes)
    return (w1, b1, w2, b2, w3, b3)


def reference_forward(x_nchw, params):
    """Pure-JAX f32 reference (eval-mode forward)."""
    w1, b1, w2, b2, w3, b3 = params
    x = x_nchw.reshape(x_nchw.shape[0], -1).astype(jnp.float32)
    h1 = jnp.maximum(x @ w1 + b1, 0.0)
    h2 = jnp.maximum(h1 @ w2 + b2, 0.0)
    logits = h2 @ w3 + b3
    return jax.nn.log_softmax(logits, axis=1)


if __name__ == "__main__":
    key = jax.random.PRNGKey(0)
    k_x, k_p = jax.random.split(key)

    # MNIST-like shape from SimpleNetwork default input_shape=(1, 28, 28).
    x = jax.random.normal(k_x, (2, 1, 28, 28), dtype=jnp.float32)
    params = init_params(k_p)

    out = parameter_server_forward(x, params)
    out = jax.block_until_ready(out)

    assert out.shape == (2, 10)
    # Sanity: log_softmax rows should (approximately) exp-sum to 1.
    row_sums = jnp.sum(jnp.exp(out), axis=1)
    assert jnp.allclose(row_sums, jnp.ones_like(row_sums), atol=1e-3)
    # Compare against f32 reference (bf16 MXU operands -> loose tolerance).
    ref = reference_forward(x, params)
    assert jnp.allclose(out, ref, atol=5e-2), float(jnp.max(jnp.abs(out - ref)))

    print("KERNEL_OK")
</pallas_src>

<mosaic_0001>
module attributes {stable_mosaic.version = 11 : i64} {
  func.func @mlp_kernel(%arg0: i32, %arg1: memref<8x784xf32, #tpu.memory_space<vmem>>, %arg2: memref<784x64xbf16, #tpu.memory_space<vmem>>, %arg3: memref<1x64xf32, #tpu.memory_space<vmem>>, %arg4: memref<64x64xbf16, #tpu.memory_space<vmem>>, %arg5: memref<1x64xf32, #tpu.memory_space<vmem>>, %arg6: memref<64x128xbf16, #tpu.memory_space<vmem>>, %arg7: memref<1x128xf32, #tpu.memory_space<vmem>>, %arg8: memref<8x128xf32, #tpu.memory_space<vmem>>) attributes {dimension_semantics = [#tpu.dimension_semantics<parallel>], iteration_bounds = array<i64: 1>, scalar_prefetch = 0 : i64, scratch_operands = 0 : i64, tpu.core_type = #tpu.core_type<tc>, window_params = [{transform_indices = @transform_0, window_bounds = array<i64: 8, 784>}, {pipeline_mode = #tpu.pipeline_mode<synchronous>, transform_indices = @transform_1, window_bounds = array<i64: 784, 64>}, {pipeline_mode = #tpu.pipeline_mode<synchronous>, transform_indices = @transform_2, window_bounds = array<i64: 1, 64>}, {pipeline_mode = #tpu.pipeline_mode<synchronous>, transform_indices = @transform_3, window_bounds = array<i64: 64, 64>}, {pipeline_mode = #tpu.pipeline_mode<synchronous>, transform_indices = @transform_4, window_bounds = array<i64: 1, 64>}, {pipeline_mode = #tpu.pipeline_mode<synchronous>, transform_indices = @transform_5, window_bounds = array<i64: 64, 128>}, {pipeline_mode = #tpu.pipeline_mode<synchronous>, transform_indices = @transform_6, window_bounds = array<i64: 1, 128>}, {transform_indices = @transform_7, window_bounds = array<i64: 8, 128>}]} {
    %c0 = arith.constant 0 : index
    %c0_0 = arith.constant 0 : index
    %0 = vector.load %arg1[%c0, %c0_0] : memref<8x784xf32, #tpu.memory_space<vmem>>, vector<8x784xf32>
    %1 = arith.truncf %0 : vector<8x784xf32> to vector<8x784xbf16>
    %c0_1 = arith.constant 0 : index
    %c0_2 = arith.constant 0 : index
    %2 = vector.load %arg2[%c0_1, %c0_2] : memref<784x64xbf16, #tpu.memory_space<vmem>>, vector<784x64xbf16>
    %cst = arith.constant dense<0.000000e+00> : vector<8x64xf32>
    %3 = tpu.matmul %1, %2, %cst {dimension_numbers = #tpu.dot_dimension_numbers<[1], [0], [0], [1], [0, 0, 1, 1], [], []>} : vector<8x784xbf16>, vector<784x64xbf16>, vector<8x64xf32> -> vector<8x64xf32>
    %c0_3 = arith.constant 0 : index
    %c0_4 = arith.constant 0 : index
    %4 = vector.load %arg3[%c0_3, %c0_4] : memref<1x64xf32, #tpu.memory_space<vmem>>, vector<1x64xf32>
    %5 = vector.broadcast %4 : vector<1x64xf32> to vector<8x64xf32>
    %6 = arith.addf %3, %5 : vector<8x64xf32>
    %cst_5 = arith.constant 0.000000e+00 : f32
    %7 = vector.broadcast %cst_5 : f32 to vector<8x64xf32>
    %8 = arith.maximumf %6, %7 : vector<8x64xf32>
    %9 = arith.truncf %8 : vector<8x64xf32> to vector<8x64xbf16>
    %c0_6 = arith.constant 0 : index
    %c0_7 = arith.constant 0 : index
    %10 = vector.load %arg4[%c0_6, %c0_7] : memref<64x64xbf16, #tpu.memory_space<vmem>>, vector<64x64xbf16>
    %cst_8 = arith.constant dense<0.000000e+00> : vector<8x64xf32>
    %11 = tpu.matmul %9, %10, %cst_8 {dimension_numbers = #tpu.dot_dimension_numbers<[1], [0], [0], [1], [0, 0, 1, 1], [], []>} : vector<8x64xbf16>, vector<64x64xbf16>, vector<8x64xf32> -> vector<8x64xf32>
    %c0_9 = arith.constant 0 : index
    %c0_10 = arith.constant 0 : index
    %12 = vector.load %arg5[%c0_9, %c0_10] : memref<1x64xf32, #tpu.memory_space<vmem>>, vector<1x64xf32>
    %13 = vector.broadcast %12 : vector<1x64xf32> to vector<8x64xf32>
    %14 = arith.addf %11, %13 : vector<8x64xf32>
    %cst_11 = arith.constant 0.000000e+00 : f32
    %15 = vector.broadcast %cst_11 : f32 to vector<8x64xf32>
    %16 = arith.maximumf %14, %15 : vector<8x64xf32>
    %17 = arith.truncf %16 : vector<8x64xf32> to vector<8x64xbf16>
    %c0_12 = arith.constant 0 : index
    %c0_13 = arith.constant 0 : index
    %18 = vector.load %arg6[%c0_12, %c0_13] : memref<64x128xbf16, #tpu.memory_space<vmem>>, vector<64x128xbf16>
    %cst_14 = arith.constant dense<0.000000e+00> : vector<8x128xf32>
    %19 = tpu.matmul %17, %18, %cst_14 {dimension_numbers = #tpu.dot_dimension_numbers<[1], [0], [0], [1], [0, 0, 1, 1], [], []>} : vector<8x64xbf16>, vector<64x128xbf16>, vector<8x128xf32> -> vector<8x128xf32>
    %c0_15 = arith.constant 0 : index
    %c0_16 = arith.constant 0 : index
    %20 = vector.load %arg7[%c0_15, %c0_16] : memref<1x128xf32, #tpu.memory_space<vmem>>, vector<1x128xf32>
    %21 = vector.broadcast %20 : vector<1x128xf32> to vector<8x128xf32>
    %22 = arith.addf %19, %21 : vector<8x128xf32>
    %cst_17 = arith.constant dense<0xFF800000> : vector<8xf32>
    %23 = vector.multi_reduction <maximumf>, %22, %cst_17 [1] : vector<8x128xf32> to vector<8xf32>
    %24 = vector.shape_cast %23 : vector<8xf32> to vector<8x1xf32>
    %25 = vector.broadcast %24 : vector<8x1xf32> to vector<8x128xf32>
    %26 = arith.subf %22, %25 : vector<8x128xf32>
    %27 = math.exp %26 : vector<8x128xf32>
    %cst_18 = arith.constant dense<0.000000e+00> : vector<8xf32>
    %28 = vector.multi_reduction <add>, %27, %cst_18 [1] : vector<8x128xf32> to vector<8xf32>
    %29 = vector.shape_cast %28 : vector<8xf32> to vector<8x1xf32>
    %30 = math.log %29 : vector<8x1xf32>
    %31 = vector.broadcast %30 : vector<8x1xf32> to vector<8x128xf32>
    %32 = arith.subf %26, %31 : vector<8x128xf32>
    %c0_19 = arith.constant 0 : index
    %c0_20 = arith.constant 0 : index
    %33 = vector.load %arg8[%c0_19, %c0_20] : memref<8x128xf32, #tpu.memory_space<vmem>>, vector<8x128xf32>
    tpu.vector_store %arg8[%c0_19, %c0_20], %32 {strides = array<i32>} : memref<8x128xf32, #tpu.memory_space<vmem>>, vector<8x128xf32>,
    return
  }
  func.func @transform_0(%arg0: i32) -> (i32, i32) {
    %c0_i32 = arith.constant 0 : i32
    %c0_i32_0 = arith.constant 0 : i32
    return %arg0, %c0_i32 : i32, i32
  }
  func.func @transform_1(%arg0: i32) -> (i32, i32) {
    %c0_i32 = arith.constant 0 : i32
    %c0_i32_0 = arith.constant 0 : i32
    %c0_i32_1 = arith.constant 0 : i32
    return %c0_i32, %c0_i32_0 : i32, i32
  }
  func.func @transform_2(%arg0: i32) -> (i32, i32) {
    %c0_i32 = arith.constant 0 : i32
    %c0_i32_0 = arith.constant 0 : i32
    %c0_i32_1 = arith.constant 0 : i32
    return %c0_i32, %c0_i32_0 : i32, i32
  }
  func.func @transform_3(%arg0: i32) -> (i32, i32) {
    %c0_i32 = arith.constant 0 : i32
    %c0_i32_0 = arith.constant 0 : i32
    %c0_i32_1 = arith.constant 0 : i32
    return %c0_i32, %c0_i32_0 : i32, i32
  }
  func.func @transform_4(%arg0: i32) -> (i32, i32) {
    %c0_i32 = arith.constant 0 : i32
    %c0_i32_0 = arith.constant 0 : i32
    %c0_i32_1 = arith.constant 0 : i32
    return %c0_i32, %c0_i32_0 : i32, i32
  }
  func.func @transform_5(%arg0: i32) -> (i32, i32) {
    %c0_i32 = arith.constant 0 : i32
    %c0_i32_0 = arith.constant 0 : i32
    %c0_i32_1 = arith.constant 0 : i32
    return %c0_i32, %c0_i32_0 : i32, i32
  }
  func.func @transform_6(%arg0: i32) -> (i32, i32) {
    %c0_i32 = arith.constant 0 : i32
    %c0_i32_0 = arith.constant 0 : i32
    %c0_i32_1 = arith.constant 0 : i32
    return %c0_i32, %c0_i32_0 : i32, i32
  }
  func.func @transform_7(%arg0: i32) -> (i32, i32) {
    %c0_i32 = arith.constant 0 : i32
    %c0_i32_0 = arith.constant 0 : i32
    return %arg0, %c0_i32 : i32, i32
  }
}

</mosaic_0001>

<bundles_post_ra>
// kernel: parameter_server_forward.1
= control target key start
LH: loop header
LB: loop body
LE: loop exit
PB: predicated region body
PF: predicated region fallthrough
CT: control target
= control target key end

     0   :  { %v1022_v44 = vmov 0.0   ;;  %vm1023_vm0 = vmmov 0   ;;  %vm440_vm1 = vcmask 130048   ;;  %vm645_vm2 = vcmask 523264   ;;  %s1285_s1 = inlined_call_operand.vmem [shape: bf16[784,64], index: 1, kind: input, shape index: {}]   ;;  %s1286_s0 = inlined_call_operand.vmem [shape: f32[8,784], index: 0, kind: input, shape index: {}]   ;;  %s1287_s3 = inlined_call_operand.vmem [shape: bf16[64,64], index: 3, kind: input, shape index: {}]   ;;  %s1288_s5 = inlined_call_operand.vmem [shape: bf16[64,128], index: 5, kind: input, shape index: {}]   ;;  %s1289_s2 = inlined_call_operand.vmem [shape: f32[1,64], index: 2, kind: input, shape index: {}]   ;;  %s1290_s4 = inlined_call_operand.vmem [shape: f32[1,64], index: 4, kind: input, shape index: {}]   ;;  %s1291_s6 = inlined_call_operand.vmem [shape: f32[1,128], index: 6, kind: input, shape index: {}]   ;;  %s1292_s7 = inlined_call_operand.vmem [shape: f32[8,128], index: 7, kind: output, shape index: {}]  }
   0x1   :  { %v961_v0 = vld [vmem:[%s1285_s1 + $0x78] sm:$0xff]   ;;  %v965_v4 = vld [vmem:[%s1285_s1 + $0x70] sm:$0xff]   ;;  %v969_v8 = vld [vmem:[%s1285_s1 + $0x68] sm:$0xff]  }
   0x2   :  { %v962_v1 = vld [vmem:[%s1285_s1 + $0x38] sm:$0xff]   ;;  %851 = vmatprep.subr.bf16.mxu0 %v961_v0  ;;  %v966_v5 = vld [vmem:[%s1285_s1 + $0x30] sm:$0xff]   ;;  %v970_v9 = vld [vmem:[%s1285_s1 + $0x28] sm:$0xff]  }
   0x3   :  { %v963_v2 = vld [vmem:[%s1285_s1 + $0xf8] sm:$0xff]   ;;  %852 = vmatpush3.bf16.msra.mxu0 %v962_v1  ;;  %v967_v6 = vld [vmem:[%s1285_s1 + $0xf0] sm:$0xff]   ;;  %v971_v10 = vld [vmem:[%s1285_s1 + $0xe8] sm:$0xff]  }
   0x4   :  { %v964_v3 = vld [vmem:[%s1285_s1 + $0xb8] sm:$0xff]   ;;  %873 = vmatprep.subr.bf16.mxu1 %v963_v2  ;;  %853 = vmatprep.subr.bf16.mxu0 %v965_v4  ;;  %v968_v7 = vld [vmem:[%s1285_s1 + $0xb0] sm:$0xff]   ;;  %v972_v11 = vld [vmem:[%s1285_s1 + $0xa8] sm:$0xff]  }
   0x5   :  { %874 = vmatpush3.bf16.msra.mxu1 %v964_v3  ;;  %v973_v12 = vld [vmem:[%s1285_s1 + $0x60] sm:$0xff]   ;;  %v977_v16 = vld [vmem:[%s1285_s1 + $0x58] sm:$0xff]   ;;  %v981_v20 = vld [vmem:[%s1285_s1 + $0x50] sm:$0xff]  }
   0x6   :  { %875 = vmatprep.subr.bf16.mxu1 %v967_v6  ;;  %v974_v13 = vld [vmem:[%s1285_s1 + $0x20] sm:$0xff]   ;;  %v978_v17 = vld [vmem:[%s1285_s1 + $0x18] sm:$0xff]   ;;  %v982_v21 = vld [vmem:[%s1285_s1 + $0x10] sm:$0xff]  }
   0x7   :  { %854 = vmatpush3.bf16.msra.mxu0 %v966_v5  ;;  %v975_v14 = vld [vmem:[%s1285_s1 + $0xe0] sm:$0xff]   ;;  %v979_v18 = vld [vmem:[%s1285_s1 + $0xd8] sm:$0xff]   ;;  %v983_v22 = vld [vmem:[%s1285_s1 + $0xd0] sm:$0xff]  }
   0x8   :  { %855 = vmatprep.subr.bf16.mxu0 %v969_v8  ;;  %v976_v15 = vld [vmem:[%s1285_s1 + $0xa0] sm:$0xff]   ;;  %v980_v19 = vld [vmem:[%s1285_s1 + $0x98] sm:$0xff]   ;;  %v984_v23 = vld [vmem:[%s1285_s1 + $0x90] sm:$0xff]  }
   0x9   :  { %876 = vmatpush3.bf16.msra.mxu1 %v968_v7  ;;  %v985_v24 = vld [vmem:[%s1285_s1 + $0x48] sm:$0xff]   ;;  %v989_v28 = vld [vmem:[%s1285_s1 + $0x40] sm:$0xff]   ;;  %v993_v36 = vld [vmem:[%s1285_s1 + $0x178] sm:$0xff]  }
   0xa   :  { %877 = vmatprep.subr.bf16.mxu1 %v971_v10  ;;  %v986_v25 = vld [vmem:[%s1285_s1 + $0x8] sm:$0xff]   ;;  %v990_v29 = vld [vmem:[%s1285_s1] sm:$0xff]   ;;  %v30_v37 = vld [vmem:[%s1286_s0 + $0x18] sm:$0xff] }
   0xb   :  { %856 = vmatpush3.bf16.msra.mxu0 %v970_v9  ;;  %v987_v26 = vld [vmem:[%s1285_s1 + $0xc8] sm:$0xff]   ;;  %v991_v30 = vld [vmem:[%s1285_s1 + $0xc0] sm:$0xff]   ;;  %v37_v38 = vpack.c.bf16 %v30_v37, %v30_v37  ;;  %v994_v39 = vld [vmem:[%s1285_s1 + $0x138] sm:$0xff]  }
   0xc   :  { %857 = vmatprep.subr.bf16.mxu0 %v973_v12  ;;  %v988_v27 = vld [vmem:[%s1285_s1 + $0x88] sm:$0xff]   ;;  %v992_v33 = vld [vmem:[%s1285_s1 + $0x80] sm:$0xff]   ;;  %v29_v40 = vld [vmem:[%s1286_s0 + $0x10] sm:$0xff] }
   0xd   :  { %878 = vmatpush3.bf16.msra.mxu1 %v972_v11  ;;  %v28_v31 = vld [vmem:[%s1286_s0 + $0x8] sm:$0xff]  ;;  %v27_v34 = vld [vmem:[%s1286_s0] sm:$0xff]  ;;  %516 = vmatprep.mubr.bf16.mxu1 %v37_v38  ;;  %v36_v41 = vpack.c.bf16 %v29_v40, %v29_v40  ;;  %v995_v42 = vld [vmem:[%s1285_s1 + $0x170] sm:$0xff]  }
   0xe   :  { %879 = vmatprep.subr.bf16.mxu1 %v975_v14  ;;  %v35_v32 = vpack.c.bf16 %v28_v31, %v28_v31  ;;  %v34_v35 = vpack.c.bf16 %v27_v34, %v27_v34  ;;  %v996_v43 = vld [vmem:[%s1285_s1 + $0x130] sm:$0xff]   ;;  %v997_v45 = vld [vmem:[%s1285_s1 + $0x168] sm:$0xff]   ;;  %v999_v47 = vld [vmem:[%s1285_s1 + $0x160] sm:$0xff]  }
   0xf   :  { %858 = vmatpush3.bf16.msra.mxu0 %v974_v13  ;;  %v998_v46 = vld [vmem:[%s1285_s1 + $0x128] sm:$0xff]   ;;  %v1000_v48 = vld [vmem:[%s1285_s1 + $0x120] sm:$0xff]   ;;  %v1001_v49 = vld [vmem:[%s1285_s1 + $0x158] sm:$0xff]  }
  0x10   :  { %859 = vmatprep.subr.bf16.mxu0 %v977_v16  ;;  %476 = vmatprep.mubr.bf16.mxu0 %v35_v32  ;;  %v1002_v50 = vld [vmem:[%s1285_s1 + $0x118] sm:$0xff]   ;;  %v1003_v51 = vld [vmem:[%s1285_s1 + $0x150] sm:$0xff]   ;;  %v1009_v52 = vld [vmem:[%s1285_s1 + $0x180] sm:$0xff]  }
  0x11   :  { %880 = vmatpush3.bf16.msra.mxu1 %v976_v15  ;;  %v32_v53 = vld [vmem:[%s1286_s0 + $0x28] sm:$0xff]  ;;  %v33_v55 = vld [vmem:[%s1286_s0 + $0x30] sm:$0xff]  ;;  %v1007_v60 = vld [vmem:[%s1285_s1 + $0x140] sm:$0xff]  }
  0x12   :  { %881 = vmatprep.subr.bf16.mxu1 %v979_v18  ;;  %v39_v54 = vpack.c.bf16 %v32_v53, %v32_v53  ;;  %v1004_v56 = vld [vmem:[%s1285_s1 + $0x110] sm:$0xff]   ;;  %v40_v57 = vpack.c.bf16 %v33_v55, %v33_v55  ;;  %v1005_v58 = vld [vmem:[%s1285_s1 + $0x148] sm:$0xff]   ;;  %v1008_v61 = vld [vmem:[%s1285_s1 + $0x100] sm:$0xff]  }
  0x13   :  { %860 = vmatpush3.bf16.msra.mxu0 %v978_v17  ;;  %v1006_v59 = vld [vmem:[%s1285_s1 + $0x108] sm:$0xff]   ;;  %v31_v62 = vld [vmem:[%s1286_s0 + $0x20] sm:$0xff]  ;;  %v1010_v0 = vld [vmem:[%s1287_s3 + $0x18] sm:$0xff]  }
  0x14   :  { %861 = vmatprep.subr.bf16.mxu0 %v981_v20  ;;  %v38_v63 = vpack.c.bf16 %v31_v62, %v31_v62  ;;  %v1011_v1 = vld [vmem:[%s1287_s3 + $0x10] sm:$0xff]   ;;  %v1012_v2 = vld [vmem:[%s1287_s3 + $0x8] sm:$0xff]   ;;  %v1013_v3 = vld [vmem:[%s1287_s3] sm:$0xff]  }
  0x15   :  { %882 = vmatpush3.bf16.msra.mxu1 %v980_v19  ;;  %v788_v17 = vld [vmem:[%s1289_s2] ss:$0 sm:$0xff]  ;;  %v1015_v31 = vld [vmem:[%s1288_s5 + $0x10] sm:$0xff]   ;;  %v1016_v32 = vld [vmem:[%s1288_s5 + $0x8] sm:$0xff]  }
  0x16   :  { %883 = vmatprep.subr.bf16.mxu1 %v983_v22  ;;  %v839_v34 = vld [vmem:[%s1290_s4] ss:$0 sm:$0xff] }
  0x17   :  { %862 = vmatpush3.bf16.msra.mxu0 %v982_v21 }
  0x18   :  { %863 = vmatprep.subr.bf16.mxu0 %v985_v24 }
  0x19   :  { %884 = vmatpush3.bf16.msra.mxu1 %v984_v23 }
  0x1a   :  { %885 = vmatprep.subr.bf16.mxu1 %v987_v26 }
  0x1b   :  { %864 = vmatpush3.bf16.msra.mxu0 %v986_v25 }
  0x1c   :  { %865 = vmatprep.subr.bf16.mxu0 %v989_v28 }
  0x1d   :  { %886 = vmatpush3.bf16.msra.mxu1 %v988_v27 }
  0x1e   :  { %887 = vmatprep.subr.bf16.mxu1 %v991_v30 }
  0x1f   :  { %866 = vmatpush3.bf16.msra.mxu0 %v990_v29  ;;  %v1014_v29 = vld [vmem:[%s1288_s5 + $0x18] sm:$0xff]  }
  0x20   :  { %895 = vmatprep.subr.bf16.mxu0 %v993_v36 }
  0x21   :  { %888 = vmatpush3.bf16.msra.mxu1 %v992_v33  ;;  %v1017_v33 = vld [vmem:[%s1288_s5] sm:$0xff]  }
  0x22   :  { %477 = vmatmul.mubr.bf16.vlgmr.msra.gmra.mxu0 %v34_v35  ;;  %929 = vmatprep.subr.bf16.mxu1 %v1022_v44 }
  0x23   :  { %896 = vmatpush3.bf16.msra.mxu0 %v994_v39  ;;  %556 = vmatprep.mubr.bf16.mxu0 %v39_v54 }
  0x24   :  { %517 = vmatmul.mubr.bf16.vlgmr.msra.gmra.mxu1 %v36_v41  ;;  %897 = vmatprep.subr.bf16.mxu0 %v995_v42  ;;  %v845_v42 = vld [vmem:[%s1291_s6] ss:$0 sm:$0xff] }
  0x25   :  { %931 = vmatprep.mubr.msk.bf16.mxu1 %vm1023_vm0, %v1022_v44  ;;  %930 = vmatpush3.bf16.msra.mxu1 %v1009_v52 }
  0x26   :  { %935 = vmatprep.subr.bf16.mxu1 %v1022_v44 }
  0x27   :  { %898 = vmatpush3.bf16.msra.mxu0 %v996_v43 }
  0x28   :  { %899 = vmatprep.subr.bf16.mxu0 %v997_v45 }
  0x2b   :  { %900 = vmatpush3.bf16.msra.mxu0 %v998_v46 }
  0x2c   :  { %901 = vmatprep.subr.bf16.mxu0 %v999_v47  ;;  %932 = vmatmul.mubr.msk.bf16.vlgmr.msra.gmra.mxu1 %vm440_vm1, %v40_v57 }
  0x2d   :  { %943 = vmatprep.mubr.msk.bf16.mxu1 %vm1023_vm0, %v1022_v44  ;;  %936 = vmatpush3.bf16.msra.mxu1 %v1010_v0 }
  0x2e   :  { %937 = vmatprep.subr.bf16.mxu1 %v1022_v44 }
  0x2f   :  { %902 = vmatpush3.bf16.msra.mxu0 %v1000_v48 }
  0x30   :  { %903 = vmatprep.subr.bf16.mxu0 %v1001_v49 }
  0x31   :  { %938 = vmatpush3.bf16.msra.mxu1 %v1011_v1 }
  0x32   :  { %939 = vmatprep.subr.bf16.mxu1 %v1022_v44 }
  0x33   :  { %904 = vmatpush3.bf16.msra.mxu0 %v1002_v50 }
  0x34   :  { %905 = vmatprep.subr.bf16.mxu0 %v1003_v51 }
  0x35   :  { %940 = vmatpush3.bf16.msra.mxu1 %v1012_v2 }
  0x36   :  { %941 = vmatprep.subr.bf16.mxu1 %v1022_v44 }
  0x37   :  { %906 = vmatpush3.bf16.msra.mxu0 %v1004_v56 }
  0x38   :  { %907 = vmatprep.subr.bf16.mxu0 %v1005_v58 }
  0x39   :  { %942 = vmatpush3.bf16.msra.mxu1 %v1013_v3 }
  0x3a   :  { %947 = vmatprep.subr.bf16.mxu1 %v1022_v44 }
  0x3b   :  { %908 = vmatpush3.bf16.msra.mxu0 %v1006_v59 }
  0x3c   :  { %909 = vmatprep.subr.bf16.mxu0 %v1007_v60 }
  0x3f   :  { %910 = vmatpush3.bf16.msra.mxu0 %v1008_v61 }
  0x42   :  { %557 = vmatmul.mubr.bf16.vlgmr.msra.gmra.mxu0 %v38_v63 }
  0xe2   :  { %v867_v4 = vpop.f32.mrf.mxu0 }
  0xe4   :  { %v868_v5 = vpop.f32.mrf.mxu0  ;;  %v889_v6 = vpop.f32.mrf.mxu1 }
  0xe5   :  { %v869_v16 = vadd.f32 %v868_v5, %v867_v4 }
  0xe6   :  { %v870_v7 = vpop.f32.mrf.mxu0  ;;  %v890_v8 = vpop.f32.mrf.mxu1 }
  0xe7   :  { %v479_v18 = vadd.f32 %v869_v16, %v788_v17  ;;  %v891_v19 = vadd.f32 %v890_v8, %v889_v6 }
  0xe8   :  { %v871_v9 = vpop.f32.mrf.mxu0  ;;  %v892_v10 = vpop.f32.mrf.mxu1 }
  0xe9   :  { %v519_v22 = vadd.f32 %v891_v19, %v479_v18 }
  0xea   :  { %v893_v11 = vpop.f32.mrf.mxu1 }
  0xec   :  { %v598_v12 = vpop.f32.mrf.mxu1 }
  0xee   :  { %v933_v13 = vpop.f32.mrf.mxu1 }
  0xf0   :  { %v601_v14 = vpop.f32.mrf.mxu1 }
  0xf2   :  { %v934_v15 = vpop.f32.mrf.mxu1 }
 0x102   :  { %v911_v20 = vpop.f32.mrf.mxu0 }
 0x104   :  { %v912_v21 = vpop.f32.mrf.mxu0 }
 0x105   :  { %v913_v23 = vadd.f32 %v912_v21, %v911_v20 }
 0x106   :  { %v914_v24 = vpop.f32.mrf.mxu0 }
 0x107   :  { %v559_v25 = vadd.f32 %v913_v23, %v519_v22 }
 0x108   :  { %v915_v26 = vpop.f32.mrf.mxu0 }
 0x109   :  { %v599_v27 = vadd.f32 %v598_v12, %v559_v25 }
 0x10b   :  { %v604_v28 = vmax.f32 %v599_v27, 0.0 }
 0x10d   :  { %v605_v30 = vpack.c.bf16 %v604_v28, %v604_v28 }
 0x10f   :  { %944 = vmatmul.mubr.msk.bf16.vlgmr.msra.gmra.mxu1 %vm645_vm2, %v605_v30 }
 0x110   :  { %948 = vmatpush3.bf16.msra.mxu1 %v1014_v29  ;;  %955 = vmatprep.mubr.msk.bf16.mxu1 %vm1023_vm0, %v1022_v44 }
 0x111   :  { %949 = vmatprep.subr.bf16.mxu1 %v1022_v44 }
 0x114   :  { %950 = vmatpush3.bf16.msra.mxu1 %v1015_v31 }
 0x115   :  { %951 = vmatprep.subr.bf16.mxu1 %v1022_v44 }
 0x118   :  { %952 = vmatpush3.bf16.msra.mxu1 %v1016_v32 }
 0x119   :  { %953 = vmatprep.subr.bf16.mxu1 %v1022_v44 }
 0x11c   :  { %954 = vmatpush3.bf16.msra.mxu1 %v1017_v33 }
 0x1cf   :  { %v683_v35 = vpop.f32.mrf.mxu1 }
 0x1d0   :  { %v684_v36 = vadd.f32 %v839_v34, %v683_v35 }
 0x1d1   :  { %v945_v37 = vpop.f32.mrf.mxu1 }
 0x1d2   :  { %v689_v38 = vmax.f32 %v684_v36, 0.0 }
 0x1d3   :  { %v686_v39 = vpop.f32.mrf.mxu1 }
 0x1d4   :  { %v690_v40 = vpack.c.bf16 %v689_v38, %v689_v38 }
 0x1d5   :  { %v946_v41 = vpop.f32.mrf.mxu1 }
 0x1d6   :  { %956 = vmatmul.mubr.msk.bf16.vlgmr.msra.gmra.mxu1 %vm645_vm2, %v690_v40 }
 0x296   :  { %v767_v43 = vpop.f32.mrf.mxu1 }
 0x297   :  { %v768_v44 = vadd.f32 %v845_v42, %v767_v43 }
 0x298   :  { %v957_v45 = vpop.f32.mrf.mxu1 }
 0x299   :  { %773 = vmax.xlane.f32.xlu0 %v768_v44 }
 0x29a   :  { %v770_v46 = vpop.f32.mrf.mxu1 }
 0x29c   :  { %v958_v47 = vpop.f32.mrf.mxu1 }
 0x322   :  { %v774_v48 = vpop.xlane.xlu0 %773 }
 0x323   :  { %v775_v49 = vsub.f32 %v768_v44, %v774_v48 }
 0x325   :  { %v776_v50 = vmul.f32 1.442695, %v775_v49 }
 0x327   :  { %1018 = vpow2.f32 %v776_v50 }
 0x334   :  { %v1019_v51 = vpop.eup %1018 }
 0x335   :  { %778 = vadd.xlane.f32.xlu0 %v1019_v51 }
 0x3be   :  { %v779_v52 = vpop.xlane.xlu0 %778 }
 0x3bf   :  { %1020 = vlog2.f32 %v779_v52 }
 0x3cc   :  { %v1021_v53 = vpop.eup %1020 }
 0x3cd   :  { %v781_v54 = vmul.f32 0.6931472, %v1021_v53 }
 0x3cf   :  { %v782_v55 = vsub.f32 %v775_v49, %v781_v54 }
 0x3d1   :  { %783 = vst [vmem:[%s1292_s7] sm:$0xff] %v782_v55 }

</bundles_post_ra>
